<compile_context>
chip_gen: v5e
topology: v5e:2x2
jax: 0.10.0
libtpu: 0.0.40
codegen_flags: <defaults>
</compile_context>

<pallas_src>
import functools
import numpy as np
import jax
import jax.numpy as jnp
from jax.experimental import pallas as pl
from jax.experimental.pallas import tpu as pltpu

# ---- model hyper-parameters (mirrors FC_CPPN.__init__) ----------------------
MOTION_SIZE = 5                 # z dimension
HIDDEN = 32                     # hidden_size H (must divide 128 for lane packing)
N_LAYERS = 3                    # n_layers
OUTPUT_SIZE = 3                 # output_size
Z_SCALE = 10.0                  # z_scale
FUN_NAMES = ("sin", "gaus", "tanh", "square")   # fun_names (fixed, deterministic)

_INV_SQRT_2PI = float(1.0 / np.sqrt(2.0 * np.pi))


def _apply_fun(name, x):
    """Element-wise activations from Fun.funs (static dispatch)."""
    if name == "sin":
        return jnp.sin(x)
    if name == "gaus":
        return _INV_SQRT_2PI * jnp.exp(-0.5 * x * x)
    if name == "tanh":
        return jnp.tanh(x)
    if name == "square":
        return x * x
    raise ValueError(name)


def _round_up(a, m):
    return ((a + m - 1) // m) * m


# ---- Pallas kernel -----------------------------------------------------------
def fc_cppn_kernel(z_ref, x_ref, y_ref, r_ref,
                   w0z_ref, w0x_ref, w0y_ref, w0r_ref, b0_ref,
                   wm_ref, bm_ref, wout_ref, bout_ref, mask_ref, o_ref,
                   *, n_layers, fun_names):
    f32 = jnp.float32

    # First layer, computed directly in "packed" form: each row of the hidden
    # state holds PACK=128//H batch points side by side on the 128 lanes,
    # courtesy of the block-diagonal row blocks of W0 (z_scale already folded
    # into the z block).
    out = (jnp.dot(z_ref[...], w0z_ref[...], preferred_element_type=f32)
           + jnp.dot(x_ref[...], w0x_ref[...], preferred_element_type=f32)
           + jnp.dot(y_ref[...], w0y_ref[...], preferred_element_type=f32)
           + jnp.dot(r_ref[...], w0r_ref[...], preferred_element_type=f32)
           + b0_ref[...])

    wm = wm_ref[...]          # (128, 128) block-diagonal shared middle Linear
    bm = bm_ref[...]          # (1, 128) lane-tiled bias
    masks = mask_ref[...]     # (n_layers * n_funs, 128) lane-tiled one-hot masks
    n_funs = len(fun_names)

    # Middle layers: shared Linear + per-layer masked activation mixing +
    # residual average.  All 4 activations are evaluated and one-hot mixed
    # (the per-layer column-permutation trick that would skip 3/4 of the EUP
    # work is intentionally not implemented).
    for l in range(n_layers):
        pre = jnp.dot(out, wm, preferred_element_type=f32) + bm
        new_out = None
        for f, name in enumerate(fun_names):
            row = l * n_funs + f
            m = masks[row:row + 1, :]                  # (1, 128)
            term = m * _apply_fun(name, pre)
            new_out = term if new_out is None else new_out + term
        out = (new_out + out) * 0.5

    # out_layer: block-diagonal Linear(H, C) + Sigmoid, still packed (T4, PACK*C).
    logits = jnp.dot(out, wout_ref[...], preferred_element_type=f32) + bout_ref[...]
    o_ref[...] = jax.nn.sigmoid(logits).astype(o_ref.dtype)


# ---- parameter packing (block-diagonal / lane-tiled) ---------------------------
def _pack_params(params):
    """Pre-pack weights so PACK = 128 // H batch points share one 128-lane row."""
    w0, b0, wm, bm, wout, bout, masks = params
    d_in, h = w0.shape
    motion = d_in - 3
    c = wout.shape[1]
    n_l, n_f, _ = masks.shape
    assert 128 % h == 0, "lane packing requires hidden_size to divide 128"
    pack = 128 // h

    def blkdiag(w):
        r, cc = w.shape
        out = jnp.zeros((pack * r, pack * cc), w.dtype)
        for q in range(pack):
            out = out.at[q * r:(q + 1) * r, q * cc:(q + 1) * cc].set(w)
        return out

    packed = dict(
        w0z=blkdiag(w0[:motion] * (1.0 / Z_SCALE)),    # fold z / z_scale into W0
        w0x=blkdiag(w0[motion:motion + 1]),
        w0y=blkdiag(w0[motion + 1:motion + 2]),
        w0r=blkdiag(w0[motion + 2:motion + 3]),
        b0=jnp.tile(b0, (1, pack)),
        wm=blkdiag(wm),
        bm=jnp.tile(bm, (1, pack)),
        wout=blkdiag(wout),
        bout=jnp.tile(bout, (1, pack)),
        masks=jnp.tile(masks.reshape(n_l * n_f, h), (1, pack)),
    )
    dims = dict(motion=motion, h=h, c=c, n_layers=n_l, n_funs=n_f, pack=pack)
    return packed, dims


# ---- wrapper -----------------------------------------------------------------
def fc_cppn_forward(x, y, r, z, params, *, tile_n=None):
    p, dims = _pack_params(params)
    pack = dims["pack"]
    motion = dims["motion"]
    h = dims["h"]
    c = dims["c"]
    n_layers = dims["n_layers"]
    N = x.shape[0]

    # --- batch tile sizing ----------------------------------------------------
    row_mult = 8 * pack                 # packed block sublane dim must be 8-aligned
    if tile_n is None:
        # Big tiles amortize the ~0.35us/step pipeline overhead; cap so large
        # renders still get >= ~8 grid steps (keeps both v7x TensorCores busy).
        tile_n = min(2048, _round_up(pl.cdiv(N, 8), row_mult))
    tile_n = max(row_mult, _round_up(tile_n, row_mult))
    tile_n = min(tile_n, _round_up(N, row_mult))
    n_pad = _round_up(N, tile_n)
    grid = (n_pad // tile_n,)
    t4 = tile_n // pack

    # --- pad & pack inputs (row-major reshapes only; no concat of [z,x,y,r]) ---
    pad = n_pad - N

    def prep(a, feat):
        a = a.astype(jnp.float32)
        if pad:
            a = jnp.pad(a, ((0, pad), (0, 0)))
        return a.reshape(n_pad // pack, pack * feat)

    z_p = prep(z, motion)
    x_p = prep(x, 1)
    y_p = prep(y, 1)
    r_p = prep(r, 1)

    kernel = functools.partial(fc_cppn_kernel, n_layers=n_layers, fun_names=FUN_NAMES)

    def fixed(a):  # small constant operand, resident every grid step
        return pl.BlockSpec(a.shape, lambda i: (0,) * a.ndim)

    cost = pl.CostEstimate(
        flops=2 * n_pad * ((motion + 3) * h + n_layers * h * h + h * c),
        transcendentals=n_pad * (n_layers * 3 * h + c),
        bytes_accessed=4 * n_pad * (motion + 3 + c),
    )

    out_packed = pl.pallas_call(
        kernel,
        out_shape=jax.ShapeDtypeStruct((n_pad // pack, pack * c), jnp.float32),
        grid_spec=pltpu.PrefetchScalarGridSpec(
            num_scalar_prefetch=0,
            grid=grid,
            in_specs=[
                pl.BlockSpec((t4, pack * motion), lambda i: (i, 0)),   # z (packed)
                pl.BlockSpec((t4, pack), lambda i: (i, 0)),            # x (packed)
                pl.BlockSpec((t4, pack), lambda i: (i, 0)),            # y (packed)
                pl.BlockSpec((t4, pack), lambda i: (i, 0)),            # r (packed)
                fixed(p["w0z"]), fixed(p["w0x"]), fixed(p["w0y"]), fixed(p["w0r"]),
                fixed(p["b0"]), fixed(p["wm"]), fixed(p["bm"]),
                fixed(p["wout"]), fixed(p["bout"]), fixed(p["masks"]),
            ],
            out_specs=pl.BlockSpec((t4, pack * c), lambda i: (i, 0)),
        ),
        compiler_params=pltpu.CompilerParams(dimension_semantics=("parallel",)),
        cost_estimate=cost,
    )(z_p, x_p, y_p, r_p,
      p["w0z"], p["w0x"], p["w0y"], p["w0r"], p["b0"],
      p["wm"], p["bm"], p["wout"], p["bout"], p["masks"])

    # Unpack (free row-major reshape) and drop the padded tail.
    return out_packed.reshape(n_pad, c)[:N]


# ---- deterministic parameter construction -------------------------------------
def init_params(key):
    D_in = MOTION_SIZE + 3
    k0, k1, k2, k3, k4, k5 = jax.random.split(key, 6)
    s = 0.5
    w0 = jax.random.normal(k0, (D_in, HIDDEN), jnp.float32) * s
    b0 = jax.random.normal(k1, (1, HIDDEN), jnp.float32) * s
    wm = jax.random.normal(k2, (HIDDEN, HIDDEN), jnp.float32) * s
    bm = jax.random.normal(k3, (1, HIDDEN), jnp.float32) * s
    wout = jax.random.normal(k4, (HIDDEN, OUTPUT_SIZE), jnp.float32) * s
    bout = jax.random.normal(k5, (1, OUTPUT_SIZE), jnp.float32) * s

    # layer_masks: per layer, a random permutation of the H columns split evenly
    # across the functions (stored here as one-hot float masks for vectorized mixing).
    rng = np.random.RandomState(0)
    masks = np.zeros((N_LAYERS, len(FUN_NAMES), HIDDEN), np.float32)
    for l in range(N_LAYERS):
        perm = rng.permutation(HIDDEN)
        for f, chunk in enumerate(np.array_split(perm, len(FUN_NAMES))):
            masks[l, f, np.sort(chunk)] = 1.0

    return (w0, b0, wm, bm, wout, bout, jnp.asarray(masks))


# ---- pure-JAX reference (same math, no Pallas) ---------------------------------
def reference_forward(x, y, r, z, params):
    w0, b0, wm, bm, wout, bout, masks = params
    inp = jnp.concatenate([z / Z_SCALE, x, y, r], axis=1).astype(jnp.float32)
    out = inp @ w0 + b0
    for l in range(N_LAYERS):
        pre = out @ wm + bm
        new_out = jnp.zeros_like(out)
        for f, name in enumerate(FUN_NAMES):
            new_out = new_out + masks[l, f][None, :] * _apply_fun(name, pre)
        out = (new_out + out) * 0.5
    return jax.nn.sigmoid(out @ wout + bout)


if __name__ == "__main__":
    key = jax.random.PRNGKey(0)
    kx, ky, kz, kp = jax.random.split(key, 4)

    # Small batch of sample points; deliberately NOT a multiple of the tile so
    # the padding path and a multi-step grid are both exercised.
    N = 200
    x = jax.random.uniform(kx, (N, 1), jnp.float32, -1.0, 1.0)
    y = jax.random.uniform(ky, (N, 1), jnp.float32, -1.0, 1.0)
    r = jnp.sqrt(x * x + y * y)
    z = jax.random.normal(kz, (N, MOTION_SIZE), jnp.float32)

    params = init_params(kp)

    out = fc_cppn_forward(x, y, r, z, params)
    jax.block_until_ready(out)

    ref = reference_forward(x, y, r, z, params)
    assert out.shape == (N, OUTPUT_SIZE)
    assert np.allclose(np.asarray(out), np.asarray(ref), atol=2e-3, rtol=2e-3)

    print("KERNEL_OK")
</pallas_src>

<mosaic_0001>
module attributes {stable_mosaic.version = 11 : i64} {
  func.func @fc_cppn_kernel(%arg0: i32, %arg1: memref<8x20xf32, #tpu.memory_space<vmem>>, %arg2: memref<8x4xf32, #tpu.memory_space<vmem>>, %arg3: memref<8x4xf32, #tpu.memory_space<vmem>>, %arg4: memref<8x4xf32, #tpu.memory_space<vmem>>, %arg5: memref<20x128xf32, #tpu.memory_space<vmem>>, %arg6: memref<4x128xf32, #tpu.memory_space<vmem>>, %arg7: memref<4x128xf32, #tpu.memory_space<vmem>>, %arg8: memref<4x128xf32, #tpu.memory_space<vmem>>, %arg9: memref<1x128xf32, #tpu.memory_space<vmem>>, %arg10: memref<128x128xf32, #tpu.memory_space<vmem>>, %arg11: memref<1x128xf32, #tpu.memory_space<vmem>>, %arg12: memref<128x12xf32, #tpu.memory_space<vmem>>, %arg13: memref<1x12xf32, #tpu.memory_space<vmem>>, %arg14: memref<12x128xf32, #tpu.memory_space<vmem>>, %arg15: memref<8x12xf32, #tpu.memory_space<vmem>>) attributes {dimension_semantics = [#tpu.dimension_semantics<parallel>], iteration_bounds = array<i64: 7>, scalar_prefetch = 0 : i64, scratch_operands = 0 : i64, tpu.core_type = #tpu.core_type<tc>, window_params = [{transform_indices = @transform_0, window_bounds = array<i64: 8, 20>}, {transform_indices = @transform_1, window_bounds = array<i64: 8, 4>}, {transform_indices = @transform_2, window_bounds = array<i64: 8, 4>}, {transform_indices = @transform_3, window_bounds = array<i64: 8, 4>}, {pipeline_mode = #tpu.pipeline_mode<synchronous>, transform_indices = @transform_4, window_bounds = array<i64: 20, 128>}, {pipeline_mode = #tpu.pipeline_mode<synchronous>, transform_indices = @transform_5, window_bounds = array<i64: 4, 128>}, {pipeline_mode = #tpu.pipeline_mode<synchronous>, transform_indices = @transform_6, window_bounds = array<i64: 4, 128>}, {pipeline_mode = #tpu.pipeline_mode<synchronous>, transform_indices = @transform_7, window_bounds = array<i64: 4, 128>}, {pipeline_mode = #tpu.pipeline_mode<synchronous>, transform_indices = @transform_8, window_bounds = array<i64: 1, 128>}, {pipeline_mode = #tpu.pipeline_mode<synchronous>, transform_indices = @transform_9, window_bounds = array<i64: 128, 128>}, {pipeline_mode = #tpu.pipeline_mode<synchronous>, transform_indices = @transform_10, window_bounds = array<i64: 1, 128>}, {pipeline_mode = #tpu.pipeline_mode<synchronous>, transform_indices = @transform_11, window_bounds = array<i64: 128, 12>}, {pipeline_mode = #tpu.pipeline_mode<synchronous>, transform_indices = @transform_12, window_bounds = array<i64: 1, 12>}, {pipeline_mode = #tpu.pipeline_mode<synchronous>, transform_indices = @transform_13, window_bounds = array<i64: 12, 128>}, {transform_indices = @transform_14, window_bounds = array<i64: 8, 12>}]} {
    %c0 = arith.constant 0 : index
    %c0_0 = arith.constant 0 : index
    %0 = vector.load %arg1[%c0, %c0_0] : memref<8x20xf32, #tpu.memory_space<vmem>>, vector<8x20xf32>
    %c0_1 = arith.constant 0 : index
    %c0_2 = arith.constant 0 : index
    %1 = vector.load %arg5[%c0_1, %c0_2] : memref<20x128xf32, #tpu.memory_space<vmem>>, vector<20x128xf32>
    %cst = arith.constant dense<0.000000e+00> : vector<8x128xf32>
    %2 = tpu.matmul %0, %1, %cst {dimension_numbers = #tpu.dot_dimension_numbers<[1], [0], [0], [1], [0, 0, 1, 1], [], []>} : vector<8x20xf32>, vector<20x128xf32>, vector<8x128xf32> -> vector<8x128xf32>
    %c0_3 = arith.constant 0 : index
    %c0_4 = arith.constant 0 : index
    %3 = vector.load %arg2[%c0_3, %c0_4] : memref<8x4xf32, #tpu.memory_space<vmem>>, vector<8x4xf32>
    %c0_5 = arith.constant 0 : index
    %c0_6 = arith.constant 0 : index
    %4 = vector.load %arg6[%c0_5, %c0_6] : memref<4x128xf32, #tpu.memory_space<vmem>>, vector<4x128xf32>
    %cst_7 = arith.constant dense<0.000000e+00> : vector<8x128xf32>
    %5 = tpu.matmul %3, %4, %cst_7 {dimension_numbers = #tpu.dot_dimension_numbers<[1], [0], [0], [1], [0, 0, 1, 1], [], []>} : vector<8x4xf32>, vector<4x128xf32>, vector<8x128xf32> -> vector<8x128xf32>
    %6 = arith.addf %2, %5 : vector<8x128xf32>
    %c0_8 = arith.constant 0 : index
    %c0_9 = arith.constant 0 : index
    %7 = vector.load %arg3[%c0_8, %c0_9] : memref<8x4xf32, #tpu.memory_space<vmem>>, vector<8x4xf32>
    %c0_10 = arith.constant 0 : index
    %c0_11 = arith.constant 0 : index
    %8 = vector.load %arg7[%c0_10, %c0_11] : memref<4x128xf32, #tpu.memory_space<vmem>>, vector<4x128xf32>
    %cst_12 = arith.constant dense<0.000000e+00> : vector<8x128xf32>
    %9 = tpu.matmul %7, %8, %cst_12 {dimension_numbers = #tpu.dot_dimension_numbers<[1], [0], [0], [1], [0, 0, 1, 1], [], []>} : vector<8x4xf32>, vector<4x128xf32>, vector<8x128xf32> -> vector<8x128xf32>
    %10 = arith.addf %6, %9 : vector<8x128xf32>
    %c0_13 = arith.constant 0 : index
    %c0_14 = arith.constant 0 : index
    %11 = vector.load %arg4[%c0_13, %c0_14] : memref<8x4xf32, #tpu.memory_space<vmem>>, vector<8x4xf32>
    %c0_15 = arith.constant 0 : index
    %c0_16 = arith.constant 0 : index
    %12 = vector.load %arg8[%c0_15, %c0_16] : memref<4x128xf32, #tpu.memory_space<vmem>>, vector<4x128xf32>
    %cst_17 = arith.constant dense<0.000000e+00> : vector<8x128xf32>
    %13 = tpu.matmul %11, %12, %cst_17 {dimension_numbers = #tpu.dot_dimension_numbers<[1], [0], [0], [1], [0, 0, 1, 1], [], []>} : vector<8x4xf32>, vector<4x128xf32>, vector<8x128xf32> -> vector<8x128xf32>
    %14 = arith.addf %10, %13 : vector<8x128xf32>
    %c0_18 = arith.constant 0 : index
    %c0_19 = arith.constant 0 : index
    %15 = vector.load %arg9[%c0_18, %c0_19] : memref<1x128xf32, #tpu.memory_space<vmem>>, vector<1x128xf32>
    %16 = vector.broadcast %15 : vector<1x128xf32> to vector<8x128xf32>
    %17 = arith.addf %14, %16 : vector<8x128xf32>
    %c0_20 = arith.constant 0 : index
    %c0_21 = arith.constant 0 : index
    %18 = vector.load %arg10[%c0_20, %c0_21] : memref<128x128xf32, #tpu.memory_space<vmem>>, vector<128x128xf32>
    %c0_22 = arith.constant 0 : index
    %c0_23 = arith.constant 0 : index
    %19 = vector.load %arg11[%c0_22, %c0_23] : memref<1x128xf32, #tpu.memory_space<vmem>>, vector<1x128xf32>
    %c0_24 = arith.constant 0 : index
    %c0_25 = arith.constant 0 : index
    %20 = vector.load %arg14[%c0_24, %c0_25] : memref<12x128xf32, #tpu.memory_space<vmem>>, vector<12x128xf32>
    %cst_26 = arith.constant dense<0.000000e+00> : vector<8x128xf32>
    %21 = tpu.matmul %17, %18, %cst_26 {dimension_numbers = #tpu.dot_dimension_numbers<[1], [0], [0], [1], [0, 0, 1, 1], [], []>} : vector<8x128xf32>, vector<128x128xf32>, vector<8x128xf32> -> vector<8x128xf32>
    %22 = vector.broadcast %19 : vector<1x128xf32> to vector<8x128xf32>
    %23 = arith.addf %21, %22 : vector<8x128xf32>
    %24 = vector.extract_strided_slice %20 {offsets = [0, 0], sizes = [1, 128], strides = [1, 1]} : vector<12x128xf32> to vector<1x128xf32>
    %25 = math.sin %23 : vector<8x128xf32>
    %26 = vector.broadcast %24 : vector<1x128xf32> to vector<8x128xf32>
    %27 = arith.mulf %26, %25 : vector<8x128xf32>
    %28 = vector.extract_strided_slice %20 {offsets = [1, 0], sizes = [1, 128], strides = [1, 1]} : vector<12x128xf32> to vector<1x128xf32>
    %cst_27 = arith.constant -5.000000e-01 : f32
    %29 = vector.broadcast %cst_27 : f32 to vector<8x128xf32>
    %30 = arith.mulf %29, %23 : vector<8x128xf32>
    %31 = arith.mulf %30, %23 : vector<8x128xf32>
    %32 = math.exp %31 : vector<8x128xf32>
    %cst_28 = arith.constant 0.398942292 : f32
    %33 = vector.broadcast %cst_28 : f32 to vector<8x128xf32>
    %34 = arith.mulf %33, %32 : vector<8x128xf32>
    %35 = vector.broadcast %28 : vector<1x128xf32> to vector<8x128xf32>
    %36 = arith.mulf %35, %34 : vector<8x128xf32>
    %37 = arith.addf %27, %36 : vector<8x128xf32>
    %38 = vector.extract_strided_slice %20 {offsets = [2, 0], sizes = [1, 128], strides = [1, 1]} : vector<12x128xf32> to vector<1x128xf32>
    %39 = math.tanh %23 : vector<8x128xf32>
    %40 = vector.broadcast %38 : vector<1x128xf32> to vector<8x128xf32>
    %41 = arith.mulf %40, %39 : vector<8x128xf32>
    %42 = arith.addf %37, %41 : vector<8x128xf32>
    %43 = vector.extract_strided_slice %20 {offsets = [3, 0], sizes = [1, 128], strides = [1, 1]} : vector<12x128xf32> to vector<1x128xf32>
    %44 = arith.mulf %23, %23 : vector<8x128xf32>
    %45 = vector.broadcast %43 : vector<1x128xf32> to vector<8x128xf32>
    %46 = arith.mulf %45, %44 : vector<8x128xf32>
    %47 = arith.addf %42, %46 : vector<8x128xf32>
    %48 = arith.addf %47, %17 : vector<8x128xf32>
    %cst_29 = arith.constant 5.000000e-01 : f32
    %49 = vector.broadcast %cst_29 : f32 to vector<8x128xf32>
    %50 = arith.mulf %48, %49 : vector<8x128xf32>
    %cst_30 = arith.constant dense<0.000000e+00> : vector<8x128xf32>
    %51 = tpu.matmul %50, %18, %cst_30 {dimension_numbers = #tpu.dot_dimension_numbers<[1], [0], [0], [1], [0, 0, 1, 1], [], []>} : vector<8x128xf32>, vector<128x128xf32>, vector<8x128xf32> -> vector<8x128xf32>
    %52 = vector.broadcast %19 : vector<1x128xf32> to vector<8x128xf32>
    %53 = arith.addf %51, %52 : vector<8x128xf32>
    %54 = vector.extract_strided_slice %20 {offsets = [4, 0], sizes = [1, 128], strides = [1, 1]} : vector<12x128xf32> to vector<1x128xf32>
    %55 = math.sin %53 : vector<8x128xf32>
    %56 = vector.broadcast %54 : vector<1x128xf32> to vector<8x128xf32>
    %57 = arith.mulf %56, %55 : vector<8x128xf32>
    %58 = vector.extract_strided_slice %20 {offsets = [5, 0], sizes = [1, 128], strides = [1, 1]} : vector<12x128xf32> to vector<1x128xf32>
    %cst_31 = arith.constant -5.000000e-01 : f32
    %59 = vector.broadcast %cst_31 : f32 to vector<8x128xf32>
    %60 = arith.mulf %59, %53 : vector<8x128xf32>
    %61 = arith.mulf %60, %53 : vector<8x128xf32>
    %62 = math.exp %61 : vector<8x128xf32>
    %cst_32 = arith.constant 0.398942292 : f32
    %63 = vector.broadcast %cst_32 : f32 to vector<8x128xf32>
    %64 = arith.mulf %63, %62 : vector<8x128xf32>
    %65 = vector.broadcast %58 : vector<1x128xf32> to vector<8x128xf32>
    %66 = arith.mulf %65, %64 : vector<8x128xf32>
    %67 = arith.addf %57, %66 : vector<8x128xf32>
    %68 = vector.extract_strided_slice %20 {offsets = [6, 0], sizes = [1, 128], strides = [1, 1]} : vector<12x128xf32> to vector<1x128xf32>
    %69 = math.tanh %53 : vector<8x128xf32>
    %70 = vector.broadcast %68 : vector<1x128xf32> to vector<8x128xf32>
    %71 = arith.mulf %70, %69 : vector<8x128xf32>
    %72 = arith.addf %67, %71 : vector<8x128xf32>
    %73 = vector.extract_strided_slice %20 {offsets = [7, 0], sizes = [1, 128], strides = [1, 1]} : vector<12x128xf32> to vector<1x128xf32>
    %74 = arith.mulf %53, %53 : vector<8x128xf32>
    %75 = vector.broadcast %73 : vector<1x128xf32> to vector<8x128xf32>
    %76 = arith.mulf %75, %74 : vector<8x128xf32>
    %77 = arith.addf %72, %76 : vector<8x128xf32>
    %78 = arith.addf %77, %50 : vector<8x128xf32>
    %cst_33 = arith.constant 5.000000e-01 : f32
    %79 = vector.broadcast %cst_33 : f32 to vector<8x128xf32>
    %80 = arith.mulf %78, %79 : vector<8x128xf32>
    %cst_34 = arith.constant dense<0.000000e+00> : vector<8x128xf32>
    %81 = tpu.matmul %80, %18, %cst_34 {dimension_numbers = #tpu.dot_dimension_numbers<[1], [0], [0], [1], [0, 0, 1, 1], [], []>} : vector<8x128xf32>, vector<128x128xf32>, vector<8x128xf32> -> vector<8x128xf32>
    %82 = vector.broadcast %19 : vector<1x128xf32> to vector<8x128xf32>
    %83 = arith.addf %81, %82 : vector<8x128xf32>
    %84 = vector.extract_strided_slice %20 {offsets = [8, 0], sizes = [1, 128], strides = [1, 1]} : vector<12x128xf32> to vector<1x128xf32>
    %85 = math.sin %83 : vector<8x128xf32>
    %86 = vector.broadcast %84 : vector<1x128xf32> to vector<8x128xf32>
    %87 = arith.mulf %86, %85 : vector<8x128xf32>
    %88 = vector.extract_strided_slice %20 {offsets = [9, 0], sizes = [1, 128], strides = [1, 1]} : vector<12x128xf32> to vector<1x128xf32>
    %cst_35 = arith.constant -5.000000e-01 : f32
    %89 = vector.broadcast %cst_35 : f32 to vector<8x128xf32>
    %90 = arith.mulf %89, %83 : vector<8x128xf32>
    %91 = arith.mulf %90, %83 : vector<8x128xf32>
    %92 = math.exp %91 : vector<8x128xf32>
    %cst_36 = arith.constant 0.398942292 : f32
    %93 = vector.broadcast %cst_36 : f32 to vector<8x128xf32>
    %94 = arith.mulf %93, %92 : vector<8x128xf32>
    %95 = vector.broadcast %88 : vector<1x128xf32> to vector<8x128xf32>
    %96 = arith.mulf %95, %94 : vector<8x128xf32>
    %97 = arith.addf %87, %96 : vector<8x128xf32>
    %98 = vector.extract_strided_slice %20 {offsets = [10, 0], sizes = [1, 128], strides = [1, 1]} : vector<12x128xf32> to vector<1x128xf32>
    %99 = math.tanh %83 : vector<8x128xf32>
    %100 = vector.broadcast %98 : vector<1x128xf32> to vector<8x128xf32>
    %101 = arith.mulf %100, %99 : vector<8x128xf32>
    %102 = arith.addf %97, %101 : vector<8x128xf32>
    %103 = vector.extract_strided_slice %20 {offsets = [11, 0], sizes = [1, 128], strides = [1, 1]} : vector<12x128xf32> to vector<1x128xf32>
    %104 = arith.mulf %83, %83 : vector<8x128xf32>
    %105 = vector.broadcast %103 : vector<1x128xf32> to vector<8x128xf32>
    %106 = arith.mulf %105, %104 : vector<8x128xf32>
    %107 = arith.addf %102, %106 : vector<8x128xf32>
    %108 = arith.addf %107, %80 : vector<8x128xf32>
    %cst_37 = arith.constant 5.000000e-01 : f32
    %109 = vector.broadcast %cst_37 : f32 to vector<8x128xf32>
    %110 = arith.mulf %108, %109 : vector<8x128xf32>
    %c0_38 = arith.constant 0 : index
    %c0_39 = arith.constant 0 : index
    %111 = vector.load %arg12[%c0_38, %c0_39] : memref<128x12xf32, #tpu.memory_space<vmem>>, vector<128x12xf32>
    %cst_40 = arith.constant dense<0.000000e+00> : vector<8x12xf32>
    %112 = tpu.matmul %110, %111, %cst_40 {dimension_numbers = #tpu.dot_dimension_numbers<[1], [0], [0], [1], [0, 0, 1, 1], [], []>} : vector<8x128xf32>, vector<128x12xf32>, vector<8x12xf32> -> vector<8x12xf32>
    %c0_41 = arith.constant 0 : index
    %c0_42 = arith.constant 0 : index
    %113 = vector.load %arg13[%c0_41, %c0_42] : memref<1x12xf32, #tpu.memory_space<vmem>>, vector<1x12xf32>
    %114 = vector.broadcast %113 : vector<1x12xf32> to vector<8x12xf32>
    %115 = arith.addf %112, %114 : vector<8x12xf32>
    %116 = arith.negf %115 : vector<8x12xf32>
    %117 = math.exp %116 : vector<8x12xf32>
    %cst_43 = arith.constant 1.000000e+00 : f32
    %118 = vector.broadcast %cst_43 : f32 to vector<8x12xf32>
    %119 = arith.addf %118, %117 : vector<8x12xf32>
    %120 = arith.divf %118, %119 : vector<8x12xf32>
    %c0_44 = arith.constant 0 : index
    %c0_45 = arith.constant 0 : index
    %121 = vector.load %arg15[%c0_44, %c0_45] : memref<8x12xf32, #tpu.memory_space<vmem>>, vector<8x12xf32>
    tpu.vector_store %arg15[%c0_44, %c0_45], %120 {strides = array<i32>} : memref<8x12xf32, #tpu.memory_space<vmem>>, vector<8x12xf32>,
    return
  }
  func.func @transform_0(%arg0: i32) -> (i32, i32) {
    %c0_i32 = arith.constant 0 : i32
    %c0_i32_0 = arith.constant 0 : i32
    return %arg0, %c0_i32 : i32, i32
  }
  func.func @transform_1(%arg0: i32) -> (i32, i32) {
    %c0_i32 = arith.constant 0 : i32
    %c0_i32_0 = arith.constant 0 : i32
    return %arg0, %c0_i32 : i32, i32
  }
  func.func @transform_2(%arg0: i32) -> (i32, i32) {
    %c0_i32 = arith.constant 0 : i32
    %c0_i32_0 = arith.constant 0 : i32
    return %arg0, %c0_i32 : i32, i32
  }
  func.func @transform_3(%arg0: i32) -> (i32, i32) {
    %c0_i32 = arith.constant 0 : i32
    %c0_i32_0 = arith.constant 0 : i32
    return %arg0, %c0_i32 : i32, i32
  }
  func.func @transform_4(%arg0: i32) -> (i32, i32) {
    %c0_i32 = arith.constant 0 : i32
    %c0_i32_0 = arith.constant 0 : i32
    %c0_i32_1 = arith.constant 0 : i32
    return %c0_i32, %c0_i32_0 : i32, i32
  }
  func.func @transform_5(%arg0: i32) -> (i32, i32) {
    %c0_i32 = arith.constant 0 : i32
    %c0_i32_0 = arith.constant 0 : i32
    %c0_i32_1 = arith.constant 0 : i32
    return %c0_i32, %c0_i32_0 : i32, i32
  }
  func.func @transform_6(%arg0: i32) -> (i32, i32) {
    %c0_i32 = arith.constant 0 : i32
    %c0_i32_0 = arith.constant 0 : i32
    %c0_i32_1 = arith.constant 0 : i32
    return %c0_i32, %c0_i32_0 : i32, i32
  }
  func.func @transform_7(%arg0: i32) -> (i32, i32) {
    %c0_i32 = arith.constant 0 : i32
    %c0_i32_0 = arith.constant 0 : i32
    %c0_i32_1 = arith.constant 0 : i32
    return %c0_i32, %c0_i32_0 : i32, i32
  }
  func.func @transform_8(%arg0: i32) -> (i32, i32) {
    %c0_i32 = arith.constant 0 : i32
    %c0_i32_0 = arith.constant 0 : i32
    %c0_i32_1 = arith.constant 0 : i32
    return %c0_i32, %c0_i32_0 : i32, i32
  }
  func.func @transform_9(%arg0: i32) -> (i32, i32) {
    %c0_i32 = arith.constant 0 : i32
    %c0_i32_0 = arith.constant 0 : i32
    %c0_i32_1 = arith.constant 0 : i32
    return %c0_i32, %c0_i32_0 : i32, i32
  }
  func.func @transform_10(%arg0: i32) -> (i32, i32) {
    %c0_i32 = arith.constant 0 : i32
    %c0_i32_0 = arith.constant 0 : i32
    %c0_i32_1 = arith.constant 0 : i32
    return %c0_i32, %c0_i32_0 : i32, i32
  }
  func.func @transform_11(%arg0: i32) -> (i32, i32) {
    %c0_i32 = arith.constant 0 : i32
    %c0_i32_0 = arith.constant 0 : i32
    %c0_i32_1 = arith.constant 0 : i32
    return %c0_i32, %c0_i32_0 : i32, i32
  }
  func.func @transform_12(%arg0: i32) -> (i32, i32) {
    %c0_i32 = arith.constant 0 : i32
    %c0_i32_0 = arith.constant 0 : i32
    %c0_i32_1 = arith.constant 0 : i32
    return %c0_i32, %c0_i32_0 : i32, i32
  }
  func.func @transform_13(%arg0: i32) -> (i32, i32) {
    %c0_i32 = arith.constant 0 : i32
    %c0_i32_0 = arith.constant 0 : i32
    %c0_i32_1 = arith.constant 0 : i32
    return %c0_i32, %c0_i32_0 : i32, i32
  }
  func.func @transform_14(%arg0: i32) -> (i32, i32) {
    %c0_i32 = arith.constant 0 : i32
    %c0_i32_0 = arith.constant 0 : i32
    return %arg0, %c0_i32 : i32, i32
  }
}

</mosaic_0001>

<bundles_post_ra>
// kernel: tpu_custom_call.1
= control target key start
LH: loop header
LB: loop body
LE: loop exit
PB: predicated region body
PF: predicated region fallthrough
CT: control target
= control target key end

     0   :  { %s1549_s29 = smov 0   ;;  %s1971_s0 = inlined_call_operand.vmem [shape: f32[56,20], index: 0, kind: input, shape index: {}]   ;;  %s1972_s1 = inlined_call_operand.vmem [shape: f32[56,4], index: 1, kind: input, shape index: {}]   ;;  %s1973_s2 = inlined_call_operand.vmem [shape: f32[56,4], index: 2, kind: input, shape index: {}]   ;;  %s1974_s3 = inlined_call_operand.vmem [shape: f32[56,4], index: 3, kind: input, shape index: {}]   ;;  %s1975_s4 = inlined_call_operand.vmem [shape: f32[20,128], index: 4, kind: input, shape index: {}]   ;;  %s1976_s5 = inlined_call_operand.vmem [shape: f32[4,128], index: 5, kind: input, shape index: {}]   ;;  %s1977_s6 = inlined_call_operand.vmem [shape: f32[4,128], index: 6, kind: input, shape index: {}]   ;;  %s1978_s7 = inlined_call_operand.vmem [shape: f32[4,128], index: 7, kind: input, shape index: {}]   ;;  %s1979_s8 = inlined_call_operand.vmem [shape: f32[1,128], index: 8, kind: input, shape index: {}]   ;;  %s1980_s9 = inlined_call_operand.vmem [shape: f32[128,128], index: 9, kind: input, shape index: {}]   ;;  %s1981_s10 = inlined_call_operand.vmem [shape: f32[1,128], index: 10, kind: input, shape index: {}]   ;;  %s1982_s11 = inlined_call_operand.vmem [shape: f32[128,12], index: 11, kind: input, shape index: {}]   ;;  %s1983_s12 = inlined_call_operand.vmem [shape: f32[1,12], index: 12, kind: input, shape index: {}]   ;;  %s1984_s13 = inlined_call_operand.vmem [shape: f32[12,128], index: 13, kind: input, shape index: {}]   ;;  %s1985_s14 = inlined_call_operand.vmem [shape: f32[56,12], index: 14, kind: output, shape index: {}]  }
   0x1 LB: > { %s1395_s30 = sadd.s32 4294967295, %s1465_s29   ;;  %p1399_p0 = scmp.ge.s32.totalorder %s1465_s29, 1  ;;  %s1465_s29 = sphi %s1549_s29, %s24_s29  }
   0x2   : > { %p438_p1 = scmp.lt.s32.totalorder %s1465_s29, 8 }
   0x4   : > { %p439_p2 = pnand %p1399_p0, %p438_p1 }
   0x5   : > { %p494_p3 = scmp.lt.s32.totalorder (!%p439_p2), %s1395_s30, 6 }
   0x6   : > { %442 = sbr.rel (%p439_p2) target bundleno = 1033 (0x409), region = 76 }
   0xb   : > { %v517_v0 = vld [vmem:[%s1975_s4 + $0x10] sm:$0xf]  ;;  %vm524_vm0 = vcmask 1043456   ;;  %v576_v1 = vld [vmem:[%s1977_s6] sm:$0xf]  ;;  %v516_v2 = vld [vmem:[%s1975_s4 + $0x8] sm:$0xff] }
   0xc   : > { %1407 = vmatpush.msk.msra.mxu1 %vm524_vm0, %v517_v0  ;;  %1409 = vmatpush.msk.msra.mxu2 %vm524_vm0, %v576_v1  ;;  %v605_v3 = vld [vmem:[%s1978_s7] sm:$0xf]  ;;  %s1993_s30 = smov (!%p494_p3, %s1395_s30), 6  ;;  %v653_v6 = vld [vmem:[%s1980_s9 + $0x78] sm:$0xff]  ;;  %v652_v7 = vld [vmem:[%s1980_s9 + $0x70] sm:$0xff]  ;;  %vm520_vm1 = vcmask 31744  }
   0xd   : > { %v519_v4 = vld [vmem:[%s1976_s5] sm:$0xf]  ;;  %1411 = vmatpush.msk.msra.mxu3 %vm524_vm0, %v605_v3  ;;  %s1581_s17 = sshll.u32 %s1993_s30, 3  ;;  %v651_v8 = vld [vmem:[%s1980_s9 + $0x68] sm:$0xff]  ;;  %vm548_vm2 = vcmask 162816   ;;  %v649_v14 = vld [vmem:[%s1980_s9 + $0x58] sm:$0xff] }
   0xe   : > { %1405 = vmatpush.msk.msra.mxu0 %vm524_vm0, %v519_v4  ;;  %v515_v5 = vld [vmem:[%s1975_s4] sm:$0xff]  ;;  %569 = vmatpush.msra.mxu1 %v516_v2  ;;  %s505_s22 = scalar_lea.vmem %s1973_s2, %s1581_s17  ;;  %s509_s26 = scalar_lea.vmem %s1974_s3, %s1581_s17  ;;  %v648_v15 = vld [vmem:[%s1980_s9 + $0x50] sm:$0xff]  ;;  %v647_v16 = vld [vmem:[%s1980_s9 + $0x48] sm:$0xff]  ;;  %v1467_v49 = vmov 683565275  }
   0xf   : > { %855 = vmatpush.msrb.mxu2 %v653_v6  ;;  %1050 = vmatpush.msrb.mxu3 %v653_v6  ;;  %v650_v9 = vld [vmem:[%s1980_s9 + $0x60] sm:$0xff]  ;;  %s501_s15 = scalar_lea.vmem %s1972_s1, %s1581_s17  ;;  %s497_s19 = scalar_lea.vmem %s1971_s0, %s1581_s17  ;;  %v645_v18 = vld [vmem:[%s1980_s9 + $0x38] sm:$0xff]  ;;  %v644_v19 = vld [vmem:[%s1980_s9 + $0x30] sm:$0xff]  ;;  %v1468_v51 = vmov 2475754826  }
  0x10   : > { %660 = vmatpush.msrb.mxu0 %v653_v6  ;;  %570 = vmatpush.msra.mxu1 %v515_v5  ;;  %v575_v10 = vld [vmem:[%s505_s22] sm:$0xff]  ;;  %v643_v20 = vld [vmem:[%s1980_s9 + $0x28] sm:$0xff]  ;;  %v641_v22 = vld [vmem:[%s1980_s9 + $0x18] sm:$0xff]  ;;  %v1469_v54 = vmov 2131351028   ;;  %s513_s18 = scalar_lea.vmem %s1985_s14, %s1581_s17 }
  0x11   : > { %856 = vmatpush.msrb.mxu2 %v652_v7  ;;  %1051 = vmatpush.msrb.mxu3 %v652_v7  ;;  %v604_v11 = vld [vmem:[%s509_s26] sm:$0xff]  ;;  %v640_v23 = vld [vmem:[%s1980_s9 + $0x10] sm:$0xff]  ;;  %v639_v24 = vld [vmem:[%s1980_s9 + $0x8] sm:$0xff]  ;;  %v1470_v57 = vmov 2102212464  }
  0x12   : > { %661 = vmatpush.msrb.mxu0 %v652_v7  ;;  %1410 = vmatmul.msk.f32.vlgmr.msra.gmra.mxu2 %vm520_vm1, %v575_v10  ;;  %v518_v12 = vld [vmem:[%s501_s15] sm:$0xff]  ;;  %v1471_v60 = vmov 920167782   ;;  %v1472_v63 = vmov 1326507024  }
  0x13   : > { %1412 = vmatmul.msk.f32.vlgmr.msra.gmra.mxu3 %vm520_vm1, %v604_v11  ;;  %1406 = vmatmul.msk.f32.vlgmr.msra.gmra.mxu0 %vm520_vm1, %v518_v12  ;;  %v514_v13 = vld [vmem:[%s497_s19] sm:$0xff] }
  0x14   : > { %662 = vmatpush.msrb.mxu0 %v651_v8  ;;  %1408 = vmatmul.msk.f32.vlgmr.msra.gmra.mxu1 %vm548_vm2, %v514_v13  ;;  %v646_v17 = vld [vmem:[%s1980_s9 + $0x40] sm:$0xff] }
  0x15   : > { %857 = vmatpush.msrb.mxu2 %v651_v8  ;;  %1052 = vmatpush.msrb.mxu3 %v651_v8  ;;  %v642_v21 = vld [vmem:[%s1980_s9 + $0x20] sm:$0xff] }
  0x16   : > { %663 = vmatpush.msrb.mxu0 %v650_v9  ;;  %v638_v25 = vld [vmem:[%s1980_s9] sm:$0xff] }
  0x17   : > { %858 = vmatpush.msrb.mxu2 %v650_v9  ;;  %1053 = vmatpush.msrb.mxu3 %v650_v9  ;;  %v1440_v32 = vld [vmem:[%s1979_s8] ss:$0 sm:$0xff] }
  0x18   : > { %664 = vmatpush.msrb.mxu0 %v649_v14  ;;  %v1653_v35 = vld [vmem:[%s1981_s10] ss:$0 sm:$0xff] }
  0x19   : > { %859 = vmatpush.msrb.mxu2 %v649_v14  ;;  %1054 = vmatpush.msrb.mxu3 %v649_v14 }
  0x1a   : > { %665 = vmatpush.msrb.mxu0 %v648_v15 }
  0x1b   : > { %860 = vmatpush.msrb.mxu2 %v648_v15  ;;  %1055 = vmatpush.msrb.mxu3 %v648_v15 }
  0x1c   : > { %666 = vmatpush.msrb.mxu0 %v647_v16 }
  0x1d   : > { %861 = vmatpush.msrb.mxu2 %v647_v16  ;;  %1056 = vmatpush.msrb.mxu3 %v647_v16 }
  0x1e   : > { %667 = vmatpush.msrb.mxu0 %v646_v17 }
  0x1f   : > { %862 = vmatpush.msrb.mxu2 %v646_v17  ;;  %1057 = vmatpush.msrb.mxu3 %v646_v17 }
  0x20   : > { %668 = vmatpush.msrb.mxu0 %v645_v18 }
  0x21   : > { %863 = vmatpush.msrb.mxu2 %v645_v18  ;;  %1058 = vmatpush.msrb.mxu3 %v645_v18 }
  0x22   : > { %669 = vmatpush.msrb.mxu0 %v644_v19 }
  0x23   : > { %864 = vmatpush.msrb.mxu2 %v644_v19  ;;  %1059 = vmatpush.msrb.mxu3 %v644_v19 }
  0x24   : > { %670 = vmatpush.msrb.mxu0 %v643_v20 }
  0x25   : > { %865 = vmatpush.msrb.mxu2 %v643_v20  ;;  %1060 = vmatpush.msrb.mxu3 %v643_v20 }
  0x26   : > { %671 = vmatpush.msrb.mxu0 %v642_v21 }
  0x27   : > { %866 = vmatpush.msrb.mxu2 %v642_v21  ;;  %1061 = vmatpush.msrb.mxu3 %v642_v21 }
  0x28   : > { %672 = vmatpush.msrb.mxu0 %v641_v22 }
  0x29   : > { %867 = vmatpush.msrb.mxu2 %v641_v22  ;;  %1062 = vmatpush.msrb.mxu3 %v641_v22 }
  0x2a   : > { %673 = vmatpush.msrb.mxu0 %v640_v23 }
  0x2b   : > { %868 = vmatpush.msrb.mxu2 %v640_v23  ;;  %1063 = vmatpush.msrb.mxu3 %v640_v23 }
  0x2c   : > { %674 = vmatpush.msrb.mxu0 %v639_v24 }
  0x2d   : > { %869 = vmatpush.msrb.mxu2 %v639_v24  ;;  %1064 = vmatpush.msrb.mxu3 %v639_v24 }
  0x2e   : > { %675 = vmatpush.msrb.mxu0 %v638_v25 }
  0x2f   : > { %870 = vmatpush.msrb.mxu2 %v638_v25  ;;  %1065 = vmatpush.msrb.mxu3 %v638_v25 }
  0x90   : > { %v545_v26 = vpop.f32.mrf.mxu0 }
  0x91   : > { %v572_v27 = vpop.f32.mrf.mxu1 }
  0x92   : > { %v573_v28 = vadd.f32 %v572_v27, %v545_v26 }
  0x95   : > { %v600_v29 = vpop.f32.mrf.mxu2 }
  0x96   : > { %v603_v30 = vadd.f32 %v600_v29, %v573_v28  ;;  %v629_v31 = vpop.f32.mrf.mxu3 }
  0x98   : > { %v632_v33 = vadd.f32 %v629_v31, %v603_v30 }
  0x9a   : > { %v1647_v34 = vadd.f32 %v1440_v32, %v632_v33  ;;  %v1473_v33 = vmov 0  }
  0x9c   : > { %676 = vmatmul.f32.vlgmr.msrb.gmra.mxu0 %v1647_v34 }
 0x119   : > { %v677_v36 = vpop.f32.mrf.mxu0 }
 0x11a   : > { %v1656_v37 = vadd.f32 %v1653_v35, %v677_v36 }
 0x11c   : > { %v683_v38 = vand.u32 2139095040, %v1656_v37  ;;  %v680_v41 = vand.u32 2147483647, %v1656_v37  ;;  %vm682_vm15 = vcmp.lt.s32.totalorder %v1656_v37, 0 }
 0x11e   : > { %v684_v39 = vshrl.u32 %v683_v38, 23  ;;  %v687_v43 = vand.u32 8388607, %v680_v41  ;;  %vm1724_vm0 = vcmp.le.f32.partialorder %v680_v41, 0.7853982 }
 0x120   : > { %v1413_v40 = vadd.s32 4294967169, %v684_v39  ;;  %v688_v47 = vor.u32 8388608, %v687_v43 }
 0x122   : > { %v690_v42 = vadd.s32 1, %v1413_v40  ;;  %v1682_v6 = vshll.u32 %v688_v47, 8 }
 0x124   : > { %vm691_vm3 = vcmp.gt.s32.totalorder %v690_v42, 0  ;;  %v729_v15 = vand.u32 65535, %v1682_v6  ;;  %v730_v16 = vshrl.u32 %v1682_v6, 16 }
 0x125   : > { %v692_v44 = vsel %vm691_vm3, %v690_v42, 0 }
 0x126   : > { %v694_v45 = vand.u32 31, %v692_v44  ;;  %v1664_v48 = vshrl.u32 %v692_v44, 5 }
 0x128   : > { %v1662_v46 = vsub.s32 32, %v694_v45  ;;  %v697_v50 = vshll.u32 %v1467_v49, %v694_v45  ;;  %v700_v52 = vshll.u32 %v1468_v51, %v694_v45  ;;  %v703_v56 = vshll.u32 %v1469_v54, %v694_v45 }
 0x129   : > { %v706_v59 = vshll.u32 %v1470_v57, %v694_v45  ;;  %v709_v62 = vshll.u32 %v1471_v60, %v694_v45  ;;  %vm712_vm4 = vcmp.lt.s32.totalorder %v1664_v48, 1  ;;  %vm715_vm5 = vcmp.lt.s32.totalorder %v1664_v48, 4 }
 0x12a   : > { %v698_v53 = vshrl.u32 %v1468_v51, %v1662_v46  ;;  %v701_v55 = vshrl.u32 %v1469_v54, %v1662_v46  ;;  %v704_v58 = vshrl.u32 %v1470_v57, %v1662_v46  ;;  %v707_v61 = vshrl.u32 %v1471_v60, %v1662_v46 }
 0x12b   : > { %v710_v0 = vshrl.u32 %v1472_v63, %v1662_v46  ;;  %vm714_vm6 = vcmp.lt.s32.totalorder %v1664_v48, 3  ;;  %vm713_vm7 = vcmp.lt.s32.totalorder %v1664_v48, 2  ;;  %v696_v47 = vshrl.u32 %v1467_v49, %v1662_v46 }
 0x12c   : > { %v699_v1 = vor.u32 %v698_v53, %v697_v50  ;;  %v702_v2 = vor.u32 %v701_v55, %v700_v52  ;;  %v705_v3 = vor.u32 %v704_v58, %v703_v56  ;;  %v708_v4 = vor.u32 %v707_v61, %v706_v59 }
 0x12d   : > { %v711_v5 = vor.u32 %v710_v0, %v709_v62 }
 0x12e   : > { %v720_v7 = vsel %vm712_vm4, %v699_v1, %v702_v2  ;;  %v724_v8 = vsel %vm712_vm4, %v702_v2, %v705_v3  ;;  %v721_v9 = vsel %vm715_vm5, %v708_v4, 920167782  ;;  %v717_v43 = vsel %vm715_vm5, %v705_v3, 2102212464 }
 0x12f   : > { %v725_v10 = vsel %vm715_vm5, %v711_v5, 1326507024  ;;  %v722_v11 = vsel %vm714_vm6, %v705_v3, %v721_v9  ;;  %v716_v58 = vsel %vm712_vm4, %v696_v47, %v699_v1  ;;  %v718_v59 = vsel %vm714_vm6, %v702_v2, %v717_v43 }
 0x130   : > { %v726_v12 = vsel %vm714_vm6, %v708_v4, %v725_v10  ;;  %v723_v13 = vsel %vm713_vm7, %v720_v7, %v722_v11  ;;  %v719_v46 = vsel %vm713_vm7, %v716_v58, %v718_v59  ;;  %vm823_vm4 = vweird.f32 %v1656_v37 }
 0x131   : > { %v727_v14 = vsel %vm713_vm7, %v724_v8, %v726_v12  ;;  %v753_v19 = vand.u32 65535, %v723_v13  ;;  %v754_v20 = vshrl.u32 %v723_v13, 16  ;;  %v773_v9 = vmul.u32 %v1682_v6, %v719_v46 }
 0x132   : > { %v731_v17 = vand.u32 65535, %v727_v14  ;;  %v732_v18 = vshrl.u32 %v727_v14, 16 }
 0x133   : > { %v756_v23 = vmul.u32 %v754_v20, %v729_v15  ;;  %v757_v24 = vmul.u32 %v753_v19, %v730_v16  ;;  %v755_v28 = vmul.u32 %v753_v19, %v729_v15  ;;  %v758_v32 = vmul.u32 %v754_v20, %v730_v16 }
 0x134   : > { %v734_v21 = vmul.u32 %v732_v18, %v729_v15  ;;  %v735_v22 = vmul.u32 %v731_v17, %v730_v16  ;;  %v733_v25 = vmul.u32 %v731_v17, %v729_v15  ;;  %v736_v27 = vmul.u32 %v732_v18, %v730_v16 }
 0x135   : > { %v759_v29 = vshll.u32 %v756_v23, 16  ;;  %v761_v38 = vshll.u32 %v757_v24, 16  ;;  %v760_v55 = vshrl.u32 %v756_v23, 16  ;;  %v762_v0 = vshrl.u32 %v757_v24, 16 }
 0x136   : > { %v737_v26 = vshll.u32 %v734_v21, 16  ;;  %v739_v30 = vshll.u32 %v735_v22, 16  ;;  %v738_v50 = vshrl.u32 %v734_v21, 16  ;;  %v740_v61 = vshrl.u32 %v735_v22, 16 }
 0x137   : > { %vm763_vm9 = vc.u32 %v755_v28, %v759_v29  ;;  %v765_v39 = vadd.s32 %v759_v29, %v755_v28 }
 0x138   : > { %vm741_vm8 = vc.u32 %v733_v25, %v737_v26  ;;  %v743_v31 = vadd.s32 %v737_v26, %v733_v25  ;;  %v764_v42 = vsel %vm763_vm9, 1, %v1473_v33 }
 0x139   : > { %v742_v36 = vsel %vm741_vm8, 1, %v1473_v33  ;;  %v766_v45 = vadd.s32 %v764_v42, %v758_v32  ;;  %vm767_vm11 = vc.u32 %v765_v39, %v761_v38  ;;  %v769_v5 = vadd.s32 %v765_v39, %v761_v38 }
 0x13a   : > { %v744_v40 = vadd.s32 %v742_v36, %v736_v27  ;;  %vm745_vm10 = vc.u32 %v743_v31, %v739_v30  ;;  %v768_v53 = vsel %vm767_vm11, 1, %v1473_v33  ;;  %v837_v30 = vmul.f32 -0.5, %v1656_v37 }
 0x13b   : > { %v746_v44 = vsel %vm745_vm10, 1, %v1473_v33  ;;  %v770_v56 = vadd.s32 %v768_v53, %v766_v45 }
 0x13c   : > { %v748_v52 = vadd.s32 %v746_v44, %v744_v40  ;;  %v838_v40 = vmul.f32 %v837_v30, %v1656_v37 }
 0x13d   : > { %v771_v3 = vadd.s32 %v770_v56, %v760_v55 }
 0x13e   : > { %v749_v62 = vadd.s32 %v748_v52, %v738_v50  ;;  %v839_v50 = vmul.f32 1.442695, %v838_v40 }
 0x13f   : > { %v772_v7 = vadd.s32 %v771_v3, %v762_v0 }
 0x140   : > { %v750_v4 = vadd.s32 %v749_v62, %v740_v61  ;;  %1443 = vpow2.f32 %v839_v50 }
 0x141   : > { %v776_v8 = vadd.s32 1, %v772_v7  ;;  %1445 = vtanh.f32 %v1656_v37 }
 0x142   : > { %vm775_vm12 = vc.u32 %v750_v4, %v769_v5  ;;  %v774_v48 = vadd.s32 %v769_v5, %v750_v4 }
 0x143   : > { %v777_v10 = vsel %vm775_vm12, %v776_v8, %v772_v7  ;;  %v1738_v7 = vld [vmem:[%s1984_s13] sm:$0xff] }
 0x144   : > { %v778_v11 = vadd.s32 %v777_v10, %v773_v9  ;;  %v842_v9 = vperm.slane %v1738_v7, 1  ;;  %v835_v10 = vperm.slane %v1738_v7, 0 }
 0x146   : > { %v779_v1 = vadd.s32 536870912, %v778_v11  ;;  %v1444_v4 = vpop.eup %1443 }
 0x148   : > { %v780_v12 = vshrl.u32 %v779_v1, 30 }
 0x14a   : > { %v781_v13 = vshll.u32 %v780_v12, 30  ;;  %v804_v36 = vsub.s32 4, %v780_v12 }
 0x14c   : > { %v782_v2 = vsub.s32 %v778_v11, %v781_v13  ;;  %v805_v44 = vsel %vm682_vm15, %v804_v36, %v780_v12  ;;  %v841_v11 = vmul.f32 0.3989423, %v1444_v4 }
 0x14d   : > { %v807_v41 = vsel %vm1724_vm0, 0, %v805_v44 }
 0x14e   : > { %vm783_vm13 = vcmp.lt.s32.totalorder %v782_v2, 0  ;;  %v784_v14 = vsub.s32 0, %v782_v2  ;;  %v824_v58 = vadd.s32 3, %v807_v41 }
 0x150   : > { %v785_v15 = vsel %vm783_vm13, %v784_v14, %v782_v2  ;;  %v825_v3 = vand.u32 3, %v824_v58  ;;  %v1446_v14 = vpop.eup %1445 }
 0x151   : > { %v786_v16 = vclz %v785_v15 }
 0x152   : > { %vm827_vm1 = vcmp.eq.s32.totalorder %v825_v3, 0  ;;  %vm830_vm2 = vcmp.eq.s32.totalorder %v825_v3, 2  ;;  %vm826_vm3 = vcmp.lt.s32.totalorder %v825_v3, 2 }
 0x153   : > { %v1414_v17 = vadd.s32 4294967294, %v786_v16 }
 0x155   : > { %vm1415_vm14 = vcmp.lt.s32.totalorder %v1414_v17, 0 }
 0x156   : > { %v789_v18 = vsel %vm1415_vm14, 0, %v1414_v17  ;;  %v843_v17 = vmul.f32 %v842_v9, %v841_v11 }
 0x157   : > { %v790_v19 = vsub.s32 32, %v789_v18  ;;  %v794_v20 = vsub.s32 4294967266, %v789_v18  ;;  %v791_v21 = vshll.u32 %v782_v2, %v789_v18  ;;  %v846_v2 = vperm.slane %v1738_v7, 2 }
 0x158   : > { %v849_v18 = vmul.f32 %v1656_v37, %v1656_v37 }
 0x159   : > { %v792_v22 = vshrl.u32 %v774_v48, %v790_v19  ;;  %v795_v23 = vadd.s32 127, %v794_v20  ;;  %v850_v48 = vperm.slane %v1738_v7, 3  ;;  %v847_v20 = vmul.f32 %v1446_v14, %v846_v2 }
 0x15b   : > { %v793_v6 = vor.u32 %v792_v22, %v791_v21  ;;  %v796_v24 = vshll.u32 %v795_v23, 23  ;;  %v851_v22 = vmul.f32 %v850_v48, %v849_v18 }
 0x15d   : > { %v797_v25 = vor.u32 4788187, %v796_v24  ;;  %v800_v27 = vcvt.s32.f32 %v793_v6 }
 0x15f   : > { %v798_v26 = vand.u32 2147483647, %v797_v25 }
 0x161   : > { %v801_v28 = vmul.f32 %v800_v27, %v798_v26 }
 0x163   : > { %v802_v29 = vxor.u32 2147483648, %v801_v28 }
 0x165   : > { %v803_v32 = vsel %vm682_vm15, %v802_v29, %v801_v28 }
 0x166   : > { %v806_v38 = vsel %vm1724_vm0, %v1656_v37, %v803_v32 }
 0x167   : > { %v808_v39 = vmul.f32 %v806_v38, %v806_v38 }
 0x169   : > { %v809_v42 = vmul.f32 -0.001358992, %v808_v39  ;;  %v816_v43 = vmul.f32 -0.00019511016, %v808_v39 }
 0x16b   : > { %v810_v45 = vadd.f32 0.041655596, %v809_v42  ;;  %v817_v47 = vadd.f32 0.008332121, %v816_v43 }
 0x16d   : > { %v811_v52 = vmul.f32 %v810_v45, %v808_v39  ;;  %v818_v53 = vmul.f32 %v817_v47, %v808_v39 }
 0x16f   : > { %v812_v55 = vadd.f32 -0.4999988, %v811_v52  ;;  %v819_v56 = vadd.f32 -0.16666654, %v818_v53 }
 0x171   : > { %v813_v59 = vmul.f32 %v812_v55, %v808_v39  ;;  %v820_v61 = vmul.f32 %v819_v56, %v808_v39 }
 0x173   : > { %v814_v62 = vadd.f32 1.0, %v813_v59  ;;  %v821_v0 = vadd.f32 1.0, %v820_v61 }
 0x175   : > { %v822_v5 = vmul.f32 %v821_v0, %v806_v38  ;;  %v831_v46 = vxor.u32 2147483648, %v814_v62 }
 0x177   : > { %v828_v8 = vxor.u32 2147483648, %v822_v5  ;;  %v832_v12 = vsel %vm830_vm2, %v831_v46, %v822_v5 }
 0x179   : > { %v829_v1 = vsel %vm827_vm1, %v814_v62, %v828_v8 }
 0x17a   : > { %v833_v13 = vsel %vm826_vm3, %v829_v1, %v832_v12 }
 0x17b   : > { %v834_v15 = vsel %vm823_vm4, nan, %v833_v13 }
 0x17c   : > { %v836_v16 = vmul.f32 %v835_v10, %v834_v15 }
 0x17e   : > { %v844_v19 = vadd.f32 %v843_v17, %v836_v16 }
 0x180   : > { %v848_v21 = vadd.f32 %v847_v20, %v844_v19 }
 0x182   : > { %v852_v23 = vadd.f32 %v851_v22, %v848_v21 }
 0x184   : > { %v853_v6 = vadd.f32 %v852_v23, %v1647_v34 }
 0x186   : > { %v1748_v24 = vmul.f32 0.5, %v853_v6 }
 0x188   : > { %871 = vmatmul.f32.vlgmr.msrb.gmra.mxu2 %v1748_v24 }
 0x20b   : > { %v872_v25 = vpop.f32.mrf.mxu2 }
 0x20c   : > { %v1752_v26 = vadd.f32 %v1653_v35, %v872_v25 }
 0x20e   : > { %v878_v27 = vand.u32 2139095040, %v1752_v26  ;;  %v875_v29 = vand.u32 2147483647, %v1752_v26  ;;  %vm877_vm1 = vcmp.lt.s32.totalorder %v1752_v26, 0 }
 0x210   : > { %v879_v37 = vshrl.u32 %v878_v27, 23  ;;  %v882_v31 = vand.u32 8388607, %v875_v29  ;;  %vm1812_vm2 = vcmp.le.f32.partialorder %v875_v29, 0.7853982 }
 0x212   : > { %v1416_v28 = vadd.s32 4294967169, %v879_v37  ;;  %v883_v38 = vor.u32 8388608, %v882_v31 }
 0x214   : > { %v885_v30 = vadd.s32 1, %v1416_v28  ;;  %v1771_v62 = vshll.u32 %v883_v38, 8 }
 0x216   : > { %vm886_vm5 = vcmp.gt.s32.totalorder %v885_v30, 0  ;;  %v924_v11 = vand.u32 65535, %v1771_v62  ;;  %v925_v1 = vshrl.u32 %v1771_v62, 16 }
 0x217   : > { %v887_v34 = vsel %vm886_vm5, %v885_v30, 0 }
 0x218   : > { %v889_v32 = vand.u32 31, %v887_v34  ;;  %v1758_v39 = vshrl.u32 %v887_v34, 5 }
 0x21a   : > { %v890_v36 = vsub.s32 32, %v889_v32  ;;  %v892_v40 = vshll.u32 %v1467_v49, %v889_v32  ;;  %v895_v42 = vshll.u32 %v1468_v51, %v889_v32  ;;  %v898_v45 = vshll.u32 %v1469_v54, %v889_v32 }
 0x21b   : > { %v901_v50 = vshll.u32 %v1470_v57, %v889_v32  ;;  %v904_v52 = vshll.u32 %v1471_v60, %v889_v32  ;;  %vm907_vm6 = vcmp.lt.s32.totalorder %v1758_v39, 1  ;;  %vm910_vm7 = vcmp.lt.s32.totalorder %v1758_v39, 4 }
 0x21c   : > { %v893_v43 = vshrl.u32 %v1468_v51, %v890_v36  ;;  %v896_v44 = vshrl.u32 %v1469_v54, %v890_v36  ;;  %v899_v47 = vshrl.u32 %v1470_v57, %v890_v36  ;;  %v902_v41 = vshrl.u32 %v1471_v60, %v890_v36 }
 0x21d   : > { %v905_v53 = vshrl.u32 %v1472_v63, %v890_v36  ;;  %vm909_vm8 = vcmp.lt.s32.totalorder %v1758_v39, 3  ;;  %vm908_vm9 = vcmp.lt.s32.totalorder %v1758_v39, 2 }
 0x21e   : > { %v894_v55 = vor.u32 %v893_v43, %v892_v40  ;;  %v897_v56 = vor.u32 %v896_v44, %v895_v42  ;;  %v900_v58 = vor.u32 %v899_v47, %v898_v45  ;;  %v903_v59 = vor.u32 %v902_v41, %v901_v50 }
 0x21f   : > { %v906_v61 = vor.u32 %v905_v53, %v904_v52  ;;  %v891_v40 = vshrl.u32 %v1467_v49, %v890_v36 }
 0x220   : > { %v915_v0 = vsel %vm907_vm6, %v894_v55, %v897_v56  ;;  %v919_v3 = vsel %vm907_vm6, %v897_v56, %v900_v58  ;;  %v916_v4 = vsel %vm910_vm7, %v903_v59, 920167782  ;;  %v912_v34 = vsel %vm910_vm7, %v900_v58, 2102212464 }
 0x221   : > { %v920_v5 = vsel %vm910_vm7, %v906_v61, 1326507024  ;;  %v917_v46 = vsel %vm909_vm8, %v900_v58, %v916_v4  ;;  %v911_v50 = vsel %vm907_vm6, %v891_v40, %v894_v55  ;;  %v913_v41 = vsel %vm909_vm8, %v897_v56, %v912_v34 }
 0x222   : > { %v921_v8 = vsel %vm909_vm8, %v903_v59, %v920_v5  ;;  %v918_v9 = vsel %vm908_vm9, %v915_v0, %v917_v46  ;;  %v914_v36 = vsel %vm908_vm9, %v911_v50, %v913_v41  ;;  %vm1018_vm6 = vweird.f32 %v1752_v26 }
 0x223   : > { %v922_v10 = vsel %vm908_vm9, %v919_v3, %v921_v8  ;;  %v948_v2 = vand.u32 65535, %v918_v9  ;;  %v949_v14 = vshrl.u32 %v918_v9, 16  ;;  %v968_v5 = vmul.u32 %v1771_v62, %v914_v36 }
 0x224   : > { %v926_v12 = vand.u32 65535, %v922_v10  ;;  %v927_v13 = vshrl.u32 %v922_v10, 16 }
 0x225   : > { %v951_v17 = vmul.u32 %v949_v14, %v924_v11  ;;  %v952_v18 = vmul.u32 %v948_v2, %v925_v1  ;;  %v950_v21 = vmul.u32 %v948_v2, %v924_v11  ;;  %v953_v25 = vmul.u32 %v949_v14, %v925_v1 }
 0x226   : > { %v929_v15 = vmul.u32 %v927_v13, %v924_v11  ;;  %v930_v16 = vmul.u32 %v926_v12, %v925_v1  ;;  %v928_v48 = vmul.u32 %v926_v12, %v924_v11  ;;  %v931_v20 = vmul.u32 %v927_v13, %v925_v1 }
 0x227   : > { %v954_v22 = vshll.u32 %v951_v17, 16  ;;  %v956_v37 = vshll.u32 %v952_v18, 16  ;;  %v955_v45 = vshrl.u32 %v951_v17, 16  ;;  %v957_v58 = vshrl.u32 %v952_v18, 16 }
 0x228   : > { %v932_v19 = vshll.u32 %v929_v15, 16  ;;  %v934_v23 = vshll.u32 %v930_v16, 16  ;;  %v933_v42 = vshrl.u32 %v929_v15, 16  ;;  %v935_v52 = vshrl.u32 %v930_v16, 16 }
 0x229   : > { %vm958_vm11 = vc.u32 %v950_v21, %v954_v22  ;;  %v960_v28 = vadd.s32 %v954_v22, %v950_v21 }
 0x22a   : > { %vm936_vm10 = vc.u32 %v928_v48, %v932_v19  ;;  %v938_v6 = vadd.s32 %v932_v19, %v928_v48  ;;  %v959_v31 = vsel %vm958_vm11, 1, %v1473_v33 }
 0x22b   : > { %v937_v27 = vsel %vm936_vm10, 1, %v1473_v33  ;;  %v961_v38 = vadd.s32 %v959_v31, %v953_v25  ;;  %vm962_vm13 = vc.u32 %v960_v28, %v956_v37  ;;  %v964_v0 = vadd.s32 %v960_v28, %v956_v37  ;;  %v1251_v25 = vld [vmem:[%s1982_s11 + $0x30] sm:$0xff] }
 0x22c   : > { %v939_v30 = vadd.s32 %v937_v27, %v931_v20  ;;  %vm940_vm12 = vc.u32 %v938_v6, %v934_v23  ;;  %v963_v44 = vsel %vm962_vm13, 1, %v1473_v33  ;;  %v1032_v6 = vmul.f32 -0.5, %v1752_v26 }
 0x22d   : > { %v941_v32 = vsel %vm940_vm12, 1, %v1473_v33  ;;  %v965_v47 = vadd.s32 %v963_v44, %v961_v38 }
 0x22e   : > { %v943_v43 = vadd.s32 %v941_v32, %v939_v30  ;;  %v1033_v31 = vmul.f32 %v1032_v6, %v1752_v26  ;;  %v1252_v6 = vld [vmem:[%s1982_s11 + $0x38] sm:$0xff] }
 0x22f   : > { %v966_v59 = vadd.s32 %v965_v47, %v955_v45 }
 0x230   : > { %v944_v53 = vadd.s32 %v943_v43, %v933_v42  ;;  %v1034_v43 = vmul.f32 1.442695, %v1033_v31  ;;  %v1248_v31 = vld [vmem:[%s1982_s11 + $0x18] sm:$0xff] }
 0x231   : > { %v967_v3 = vadd.s32 %v966_v59, %v957_v58 }
 0x232   : > { %v945_v61 = vadd.s32 %v944_v53, %v935_v52  ;;  %1447 = vpow2.f32 %v1034_v43 }
 0x233   : > { %v971_v4 = vadd.s32 1, %v967_v3  ;;  %1449 = vtanh.f32 %v1752_v26 }
 0x234   : > { %vm970_vm14 = vc.u32 %v945_v61, %v964_v0  ;;  %v969_v39 = vadd.s32 %v964_v0, %v945_v61 }
 0x235   : > { %v972_v46 = vsel %vm970_vm14, %v971_v4, %v967_v3 }
 0x236   : > { %v973_v8 = vadd.s32 %v972_v46, %v968_v5  ;;  %v1037_v5 = vperm.slane %v1738_v7, 5  ;;  %v1030_v46 = vperm.slane %v1738_v7, 4 }
 0x238   : > { %v974_v55 = vadd.s32 536870912, %v973_v8  ;;  %v1448_v0 = vpop.eup %1447 }
 0x23a   : > { %v975_v9 = vshrl.u32 %v974_v55, 30 }
 0x23c   : > { %v976_v10 = vshll.u32 %v975_v9, 30  ;;  %v999_v37 = vsub.s32 4, %v975_v9 }
 0x23e   : > { %v977_v56 = vsub.s32 %v973_v8, %v976_v10  ;;  %v1000_v38 = vsel %vm877_vm1, %v999_v37, %v975_v9  ;;  %v1036_v8 = vmul.f32 0.3989423, %v1448_v0  ;;  %v1249_v37 = vld [vmem:[%s1982_s11 + $0x20] sm:$0xff] }
 0x23f   : > { %v1002_v29 = vsel %vm1812_vm2, 0, %v1000_v38 }
 0x240   : > { %vm978_vm15 = vcmp.lt.s32.totalorder %v977_v56, 0  ;;  %v979_v11 = vsub.s32 0, %v977_v56  ;;  %v1019_v41 = vadd.s32 3, %v1002_v29 }
 0x242   : > { %v980_v1 = vsel %vm978_vm15, %v979_v11, %v977_v56  ;;  %v1020_v61 = vand.u32 3, %v1019_v41  ;;  %v1450_v11 = vpop.eup %1449 }
 0x243   : > { %v981_v12 = vclz %v980_v1 }
 0x244   : > { %vm1022_vm3 = vcmp.eq.s32.totalorder %v1020_v61, 0  ;;  %vm1025_vm4 = vcmp.eq.s32.totalorder %v1020_v61, 2  ;;  %vm1021_vm5 = vcmp.lt.s32.totalorder %v1020_v61, 2 }
 0x245   : > { %v1417_v13 = vadd.s32 4294967294, %v981_v12 }
 0x247   : > { %vm1418_vm0 = vcmp.lt.s32.totalorder %v1417_v13, 0 }
 0x248   : > { %v984_v2 = vsel %vm1418_vm0, 0, %v1417_v13  ;;  %v1038_v13 = vmul.f32 %v1037_v5, %v1036_v8 }
 0x249   : > { %v985_v14 = vsub.s32 32, %v984_v2  ;;  %v989_v15 = vsub.s32 4294967266, %v984_v2  ;;  %v986_v16 = vshll.u32 %v977_v56, %v984_v2  ;;  %v1041_v56 = vperm.slane %v1738_v7, 6 }
 0x24a   : > { %v1044_v2 = vmul.f32 %v1752_v26, %v1752_v26 }
 0x24b   : > { %v987_v17 = vshrl.u32 %v969_v39, %v985_v14  ;;  %v990_v18 = vadd.s32 127, %v989_v15  ;;  %v1045_v39 = vperm.slane %v1738_v7, 7  ;;  %v1042_v15 = vmul.f32 %v1450_v11, %v1041_v56  ;;  %v1258_v7 = vld [vmem:[%s1982_s11 + $0x68] sm:$0xff] }
 0x24d   : > { %v988_v62 = vor.u32 %v987_v17, %v986_v16  ;;  %v991_v48 = vshll.u32 %v990_v18, 23  ;;  %v1046_v17 = vmul.f32 %v1045_v39, %v1044_v2 }
 0x24f   : > { %v992_v19 = vor.u32 4788187, %v991_v48  ;;  %v995_v21 = vcvt.s32.f32 %v988_v62 }
 0x251   : > { %v993_v20 = vand.u32 2147483647, %v992_v19  ;;  %v1260_v19 = vld [vmem:[%s1982_s11 + $0x78] sm:$0xff] }
 0x252   : > { %1265 = vmatpush.msrb.mxu1 %v1260_v19 }
 0x253   : > { %v996_v22 = vmul.f32 %v995_v21, %v993_v20  ;;  %v1256_v20 = vld [vmem:[%s1982_s11 + $0x58] sm:$0xff]  ;;  %v1255_v21 = vld [vmem:[%s1982_s11 + $0x50] sm:$0xff] }
 0x255   : > { %v997_v23 = vxor.u32 2147483648, %v996_v22 }
 0x257   : > { %v998_v27 = vsel %vm877_vm1, %v997_v23, %v996_v22  ;;  %v1254_v22 = vld [vmem:[%s1982_s11 + $0x48] sm:$0xff]  ;;  %v1253_v23 = vld [vmem:[%s1982_s11 + $0x40] sm:$0xff] }
 0x258   : > { %v1001_v28 = vsel %vm1812_vm2, %v1752_v26, %v998_v27  ;;  %v1259_v26 = vld [vmem:[%s1982_s11 + $0x70] sm:$0xff]  ;;  %v1250_v27 = vld [vmem:[%s1982_s11 + $0x28] sm:$0xff] }
 0x259   : > { %v1003_v30 = vmul.f32 %v1001_v28, %v1001_v28  ;;  %1266 = vmatpush.msrb.mxu1 %v1259_v26 }
 0x25b   : > { %v1004_v34 = vmul.f32 -0.001358992, %v1003_v30  ;;  %v1011_v32 = vmul.f32 -0.00019511016, %v1003_v30  ;;  %1267 = vmatpush.msrb.mxu1 %v1258_v7 }
 0x25d   : > { %v1005_v40 = vadd.f32 0.041655596, %v1004_v34  ;;  %v1012_v42 = vadd.f32 0.008332121, %v1011_v32  ;;  %v1247_v32 = vld [vmem:[%s1982_s11 + $0x10] sm:$0xff] }
 0x25f   : > { %v1006_v44 = vmul.f32 %v1005_v40, %v1003_v30  ;;  %v1013_v45 = vmul.f32 %v1012_v42, %v1003_v30  ;;  %v1246_v40 = vld [vmem:[%s1982_s11 + $0x8] sm:$0xff]  ;;  %v1245_v42 = vld [vmem:[%s1982_s11] sm:$0xff] }
 0x261   : > { %v1007_v47 = vadd.f32 -0.4999988, %v1006_v44  ;;  %v1014_v50 = vadd.f32 -0.16666654, %v1013_v45 }
 0x263   : > { %v1008_v52 = vmul.f32 %v1007_v47, %v1003_v30  ;;  %v1015_v53 = vmul.f32 %v1014_v50, %v1003_v30 }
 0x265   : > { %v1009_v58 = vadd.f32 1.0, %v1008_v52  ;;  %v1016_v59 = vadd.f32 1.0, %v1015_v53 }
 0x267   : > { %v1017_v36 = vmul.f32 %v1016_v59, %v1001_v28  ;;  %v1026_v3 = vxor.u32 2147483648, %v1009_v58 }
 0x269   : > { %v1023_v4 = vxor.u32 2147483648, %v1017_v36  ;;  %v1027_v9 = vsel %vm1025_vm4, %v1026_v3, %v1017_v36 }
 0x26b   : > { %v1024_v55 = vsel %vm1022_vm3, %v1009_v58, %v1023_v4 }
 0x26c   : > { %v1028_v10 = vsel %vm1021_vm5, %v1024_v55, %v1027_v9 }
 0x26d   : > { %v1029_v1 = vsel %vm1018_vm6, nan, %v1028_v10 }
 0x26e   : > { %v1031_v12 = vmul.f32 %v1030_v46, %v1029_v1 }
 0x270   : > { %v1039_v14 = vadd.f32 %v1038_v13, %v1031_v12 }
 0x272   : > { %v1043_v16 = vadd.f32 %v1042_v15, %v1039_v14 }
 0x274   : > { %v1047_v18 = vadd.f32 %v1046_v17, %v1043_v16 }
 0x276   : > { %v1048_v62 = vadd.f32 %v1047_v18, %v1748_v24  ;;  %v1257_v24 = vld [vmem:[%s1982_s11 + $0x60] sm:$0xff] }
 0x277   : > { %1268 = vmatpush.msrb.mxu1 %v1257_v24 }
 0x278   : > { %v1831_v48 = vmul.f32 0.5, %v1048_v62 }
 0x279   : > { %1269 = vmatpush.msrb.mxu1 %v1256_v20 }
 0x27a   : > { %1066 = vmatmul.f32.vlgmr.msrb.gmra.mxu3 %v1831_v48 }
 0x27b   : > { %1270 = vmatpush.msrb.mxu1 %v1255_v21 }
 0x27d   : > { %1271 = vmatpush.msrb.mxu1 %v1254_v22 }
 0x27f   : > { %1272 = vmatpush.msrb.mxu1 %v1253_v23 }
 0x281   : > { %1273 = vmatpush.msrb.mxu1 %v1252_v6 }
 0x283   : > { %1274 = vmatpush.msrb.mxu1 %v1251_v25 }
 0x285   : > { %1275 = vmatpush.msrb.mxu1 %v1250_v27 }
 0x287   : > { %1276 = vmatpush.msrb.mxu1 %v1249_v37 }
 0x289   : > { %1277 = vmatpush.msrb.mxu1 %v1248_v31 }
 0x28b   : > { %1278 = vmatpush.msrb.mxu1 %v1247_v32 }
 0x28d   : > { %1279 = vmatpush.msrb.mxu1 %v1246_v40 }
 0x28f   : > { %1280 = vmatpush.msrb.mxu1 %v1245_v42 }
 0x2fd   : > { %v1067_v28 = vpop.f32.mrf.mxu3 }
 0x2fe   : > { %v1871_v30 = vadd.f32 %v1653_v35, %v1067_v28 }
 0x300   : > { %v1073_v34 = vand.u32 2139095040, %v1871_v30  ;;  %v1070_v43 = vand.u32 2147483647, %v1871_v30  ;;  %vm1072_vm3 = vcmp.lt.s32.totalorder %v1871_v30, 0 }
 0x302   : > { %v1074_v38 = vshrl.u32 %v1073_v34, 23  ;;  %v1077_v44 = vand.u32 8388607, %v1070_v43  ;;  %vm1943_vm4 = vcmp.le.f32.partialorder %v1070_v43, 0.7853982 }
 0x304   : > { %v1419_v35 = vadd.s32 4294967169, %v1074_v38  ;;  %v1078_v41 = vor.u32 8388608, %v1077_v44 }
 0x306   : > { %v1080_v29 = vadd.s32 1, %v1419_v35 }
 0x308   : > { %vm1081_vm7 = vcmp.gt.s32.totalorder %v1080_v29, 0 }
 0x309   : > { %v1082_v45 = vsel %vm1081_vm7, %v1080_v29, 0 }
 0x30a   : > { %v1084_v47 = vand.u32 31, %v1082_v45  ;;  %v1889_v52 = vshrl.u32 %v1082_v45, 5 }
 0x30c   : > { %v1085_v50 = vsub.s32 32, %v1084_v47  ;;  %v1087_v53 = vshll.u32 %v1467_v49, %v1084_v47  ;;  %v1090_v58 = vshll.u32 %v1468_v51, %v1084_v47  ;;  %v1093_v0 = vshll.u32 %v1469_v54, %v1084_v47 }
 0x30d   : > { %v1096_v3 = vshll.u32 %v1470_v57, %v1084_v47  ;;  %v1099_v5 = vshll.u32 %v1471_v60, %v1084_v47  ;;  %vm1102_vm8 = vcmp.lt.s32.totalorder %v1889_v52, 1  ;;  %vm1105_vm9 = vcmp.lt.s32.totalorder %v1889_v52, 4 }
 0x30e   : > { %v1088_v59 = vshrl.u32 %v1468_v51, %v1085_v50  ;;  %v1091_v61 = vshrl.u32 %v1469_v54, %v1085_v50  ;;  %v1094_v36 = vshrl.u32 %v1470_v57, %v1085_v50  ;;  %v1097_v4 = vshrl.u32 %v1471_v60, %v1085_v50 }
 0x30f   : > { %v1100_v46 = vshrl.u32 %v1472_v63, %v1085_v50  ;;  %v1902_v51 = vshll.u32 %v1078_v41, 8  ;;  %vm1104_vm10 = vcmp.lt.s32.totalorder %v1889_v52, 3  ;;  %vm1103_vm11 = vcmp.lt.s32.totalorder %v1889_v52, 2 }
 0x310   : > { %v1089_v8 = vor.u32 %v1088_v59, %v1087_v53  ;;  %v1092_v55 = vor.u32 %v1091_v61, %v1090_v58  ;;  %v1095_v9 = vor.u32 %v1094_v36, %v1093_v0  ;;  %v1098_v10 = vor.u32 %v1097_v4, %v1096_v3 }
 0x311   : > { %v1101_v56 = vor.u32 %v1100_v46, %v1099_v5  ;;  %v1119_v2 = vand.u32 65535, %v1902_v51  ;;  %v1120_v39 = vshrl.u32 %v1902_v51, 16  ;;  %v1086_v35 = vshrl.u32 %v1467_v49, %v1085_v50 }
 0x312   : > { %v1110_v54 = vsel %vm1102_vm8, %v1089_v8, %v1092_v55  ;;  %v1114_v57 = vsel %vm1102_vm8, %v1092_v55, %v1095_v9  ;;  %v1111_v60 = vsel %vm1105_vm9, %v1098_v10, 920167782  ;;  %v1107_v32 = vsel %vm1105_vm9, %v1095_v9, 2102212464 }
 0x313   : > { %v1115_v63 = vsel %vm1105_vm9, %v1101_v56, 1326507024  ;;  %v1112_v11 = vsel %vm1104_vm10, %v1095_v9, %v1111_v60  ;;  %v1106_v41 = vsel %vm1102_vm8, %v1086_v35, %v1089_v8  ;;  %v1108_v53 = vsel %vm1104_vm10, %v1092_v55, %v1107_v32 }
 0x314   : > { %v1116_v1 = vsel %vm1104_vm10, %v1098_v10, %v1115_v63  ;;  %v1113_v12 = vsel %vm1103_vm11, %v1110_v54, %v1112_v11  ;;  %v1109_v49 = vsel %vm1103_vm11, %v1106_v41, %v1108_v53  ;;  %v656_v53 = vld [vmem:[%s1984_s13 + $0x8] sm:$0xf]  ;;  %vm1213_vm8 = vweird.f32 %v1871_v30 }
 0x315   : > { %v1117_v13 = vsel %vm1103_vm11, %v1114_v57, %v1116_v1  ;;  %v1143_v16 = vand.u32 65535, %v1113_v12  ;;  %v1144_v17 = vshrl.u32 %v1113_v12, 16  ;;  %v1163_v4 = vmul.u32 %v1902_v51, %v1109_v49 }
 0x316   : > { %v1121_v14 = vand.u32 65535, %v1117_v13  ;;  %v1122_v15 = vshrl.u32 %v1117_v13, 16 }
 0x317   : > { %v1146_v19 = vmul.u32 %v1144_v17, %v1119_v2  ;;  %v1147_v26 = vmul.u32 %v1143_v16, %v1120_v39  ;;  %v1145_v21 = vmul.u32 %v1143_v16, %v1119_v2  ;;  %v1148_v25 = vmul.u32 %v1144_v17, %v1120_v39 }
 0x318   : > { %v1124_v18 = vmul.u32 %v1122_v15, %v1119_v2  ;;  %v1125_v62 = vmul.u32 %v1121_v14, %v1120_v39  ;;  %v1123_v7 = vmul.u32 %v1121_v14, %v1119_v2  ;;  %v1126_v20 = vmul.u32 %v1122_v15, %v1120_v39 }
 0x319   : > { %v1149_v22 = vshll.u32 %v1146_v19, 16  ;;  %v1151_v37 = vshll.u32 %v1147_v26, 16  ;;  %v1150_v45 = vshrl.u32 %v1146_v19, 16  ;;  %v1152_v61 = vshrl.u32 %v1147_v26, 16 }
 0x31a   : > { %v1127_v24 = vshll.u32 %v1124_v18, 16  ;;  %v1129_v23 = vshll.u32 %v1125_v62, 16  ;;  %v1128_v42 = vshrl.u32 %v1124_v18, 16  ;;  %v1130_v58 = vshrl.u32 %v1125_v62, 16 }
 0x31b   : > { %vm1153_vm13 = vc.u32 %v1145_v21, %v1149_v22  ;;  %v1155_v28 = vadd.s32 %v1149_v22, %v1145_v21  ;;  %v1227_v62 = vmul.f32 -0.5, %v1871_v30 }
 0x31c   : > { %vm1131_vm12 = vc.u32 %v1123_v7, %v1127_v24  ;;  %v1133_v6 = vadd.s32 %v1127_v24, %v1123_v7  ;;  %v1154_v34 = vsel %vm1153_vm13, 1, %v1473_v33 }
 0x31d   : > { %v1132_v27 = vsel %vm1131_vm12, 1, %v1473_v33  ;;  %v1156_v40 = vadd.s32 %v1154_v34, %v1148_v25  ;;  %vm1157_vm15 = vc.u32 %v1155_v28, %v1151_v37  ;;  %v1159_v3 = vadd.s32 %v1155_v28, %v1151_v37 }
 0x31e   : > { %v1134_v31 = vadd.s32 %v1132_v27, %v1126_v20  ;;  %vm1135_vm14 = vc.u32 %v1133_v6, %v1129_v23  ;;  %v1158_v44 = vsel %vm1157_vm15, 1, %v1473_v33  ;;  %v1228_v21 = vmul.f32 %v1227_v62, %v1871_v30 }
 0x31f   : > { %v1136_v38 = vsel %vm1135_vm14, 1, %v1473_v33  ;;  %v1160_v47 = vadd.s32 %v1158_v44, %v1156_v40  ;;  %vm1304_vm12 = vcmask 97280  }
 0x320   : > { %v1138_v29 = vadd.s32 %v1136_v38, %v1134_v31  ;;  %v1229_v37 = vmul.f32 1.442695, %v1228_v21 }
 0x321   : > { %v1161_v0 = vadd.s32 %v1160_v47, %v1150_v45 }
 0x322   : > { %v1139_v59 = vadd.s32 %v1138_v29, %v1128_v42  ;;  %1451 = vpow2.f32 %v1229_v37 }
 0x323   : > { %v1162_v50 = vadd.s32 %v1161_v0, %v1152_v61  ;;  %1453 = vtanh.f32 %v1871_v30  ;;  %v1225_v61 = vperm.slane %v656_v53, 0 }
 0x324   : > { %v1140_v36 = vadd.s32 %v1139_v59, %v1130_v58  ;;  %v1232_v59 = vperm.slane %v656_v53, 1 }
 0x325   : > { %v1166_v33 = vadd.s32 1, %v1162_v50 }
 0x326   : > { %vm1165_vm0 = vc.u32 %v1140_v36, %v1159_v3  ;;  %v1164_v52 = vadd.s32 %v1159_v3, %v1140_v36 }
 0x327   : > { %v1167_v5 = vsel %vm1165_vm0, %v1166_v33, %v1162_v50  ;;  %v1236_v50 = vperm.slane %v656_v53, 2 }
 0x328   : > { %v1168_v46 = vadd.s32 %v1167_v5, %v1163_v4  ;;  %v1452_v45 = vpop.eup %1451 }
 0x329   : > { %v1231_v0 = vmul.f32 0.3989423, %v1452_v45  ;;  %v1454_v33 = vpop.eup %1453 }
 0x32a   : > { %v1169_v8 = vadd.s32 536870912, %v1168_v46 }
 0x32c   : > { %v1170_v9 = vshrl.u32 %v1169_v8, 30  ;;  %v1239_v8 = vmul.f32 %v1871_v30, %v1871_v30 }
 0x32e   : > { %v1171_v10 = vshll.u32 %v1170_v9, 30  ;;  %v1194_v7 = vsub.s32 4, %v1170_v9 }
 0x330   : > { %v1172_v55 = vsub.s32 %v1168_v46, %v1171_v10  ;;  %v1195_v6 = vsel %vm1072_vm3, %v1194_v7, %v1170_v9  ;;  %v1233_v46 = vmul.f32 %v1232_v59, %v1231_v0  ;;  %v1240_v9 = vperm.slane %v656_v53, 3 }
 0x331   : > { %v1197_v43 = vsel %vm1943_vm4, 0, %v1195_v6 }
 0x332   : > { %vm1173_vm1 = vcmp.lt.s32.totalorder %v1172_v55, 0  ;;  %v1174_v56 = vsub.s32 0, %v1172_v55  ;;  %v1214_v38 = vadd.s32 3, %v1197_v43 }
 0x334   : > { %v1175_v54 = vsel %vm1173_vm1, %v1174_v56, %v1172_v55  ;;  %v1215_v44 = vand.u32 3, %v1214_v38 }
 0x335   : > { %v1176_v57 = vclz %v1175_v54  ;;  %v1241_v54 = vmul.f32 %v1240_v9, %v1239_v8 }
 0x336   : > { %vm1217_vm5 = vcmp.eq.s32.totalorder %v1215_v44, 0  ;;  %vm1220_vm6 = vcmp.eq.s32.totalorder %v1215_v44, 2  ;;  %vm1216_vm7 = vcmp.lt.s32.totalorder %v1215_v44, 2 }
 0x337   : > { %v1420_v60 = vadd.s32 4294967294, %v1176_v57 }
 0x339   : > { %vm1421_vm2 = vcmp.lt.s32.totalorder %v1420_v60, 0 }
 0x33a   : > { %v1179_v63 = vsel %vm1421_vm2, 0, %v1420_v60 }
 0x33b   : > { %v1180_v11 = vsub.s32 32, %v1179_v63  ;;  %v1184_v1 = vsub.s32 4294967266, %v1179_v63  ;;  %v1181_v12 = vshll.u32 %v1172_v55, %v1179_v63  ;;  %v1237_v55 = vmul.f32 %v1454_v33, %v1236_v50 }
 0x33d   : > { %v1182_v13 = vshrl.u32 %v1164_v52, %v1180_v11  ;;  %v1185_v2 = vadd.s32 127, %v1184_v1  ;;  %v1442_v52 = vld [vmem:[%s1983_s12] ss:$0 sm:$0xff] }
 0x33f   : > { %v1183_v51 = vor.u32 %v1182_v13, %v1181_v12  ;;  %v1186_v39 = vshll.u32 %v1185_v2, 23 }
 0x341   : > { %v1187_v14 = vor.u32 4788187, %v1186_v39  ;;  %v1190_v16 = vcvt.s32.f32 %v1183_v51 }
 0x343   : > { %v1188_v15 = vand.u32 2147483647, %v1187_v14 }
 0x345   : > { %v1191_v17 = vmul.f32 %v1190_v16, %v1188_v15 }
 0x347   : > { %v1192_v18 = vxor.u32 2147483648, %v1191_v17 }
 0x349   : > { %v1193_v26 = vsel %vm1072_vm3, %v1192_v18, %v1191_v17 }
 0x34a   : > { %v1196_v24 = vsel %vm1943_vm4, %v1871_v30, %v1193_v26 }
 0x34b   : > { %v1198_v20 = vmul.f32 %v1196_v24, %v1196_v24 }
 0x34d   : > { %v1199_v22 = vmul.f32 -0.001358992, %v1198_v20  ;;  %v1206_v23 = vmul.f32 -0.00019511016, %v1198_v20 }
 0x34f   : > { %v1200_v25 = vadd.f32 0.041655596, %v1199_v22  ;;  %v1207_v27 = vadd.f32 0.008332121, %v1206_v23 }
 0x351   : > { %v1201_v28 = vmul.f32 %v1200_v25, %v1198_v20  ;;  %v1208_v31 = vmul.f32 %v1207_v27, %v1198_v20 }
 0x353   : > { %v1202_v34 = vadd.f32 -0.4999988, %v1201_v28  ;;  %v1209_v32 = vadd.f32 -0.16666654, %v1208_v31 }
 0x355   : > { %v1203_v40 = vmul.f32 %v1202_v34, %v1198_v20  ;;  %v1210_v35 = vmul.f32 %v1209_v32, %v1198_v20 }
 0x357   : > { %v1204_v42 = vadd.f32 1.0, %v1203_v40  ;;  %v1211_v29 = vadd.f32 1.0, %v1210_v35 }
 0x359   : > { %v1212_v47 = vmul.f32 %v1211_v29, %v1196_v24  ;;  %v1221_v41 = vxor.u32 2147483648, %v1204_v42 }
 0x35b   : > { %v1218_v58 = vxor.u32 2147483648, %v1212_v47  ;;  %v1222_v3 = vsel %vm1220_vm6, %v1221_v41, %v1212_v47 }
 0x35d   : > { %v1219_v36 = vsel %vm1217_vm5, %v1204_v42, %v1218_v58 }
 0x35e   : > { %v1223_v49 = vsel %vm1216_vm7, %v1219_v36, %v1222_v3 }
 0x35f   : > { %v1224_v4 = vsel %vm1213_vm8, nan, %v1223_v49 }
 0x360   : > { %v1226_v5 = vmul.f32 %v1225_v61, %v1224_v4 }
 0x362   : > { %v1234_v10 = vadd.f32 %v1233_v46, %v1226_v5 }
 0x364   : > { %v1238_v56 = vadd.f32 %v1237_v55, %v1234_v10 }
 0x366   : > { %v1242_v57 = vadd.f32 %v1241_v54, %v1238_v56 }
 0x368   : > { %v1243_v60 = vadd.f32 %v1242_v57, %v1831_v48 }
 0x36a   : > { %v1244_v63 = vmul.f32 0.5, %v1243_v60 }
 0x36c   : > { %1281 = vmatmul.f32.vlgmr.msrb.gmra.mxu1 %v1244_v63 }
 0x3e9   : > { %v1282_v11 = vpop.f32.mrf.mxu1 }
 0x3ea   : > { %v1283_v1 = vadd.f32 %v1442_v52, %v1282_v11 }
 0x3ec   : > { %v1422_v12 = vmul.f32 -1.442695, %v1283_v1 }
 0x3ee   : > { %1455 = vpow2.f32 %v1422_v12 }
 0x3f4   : > { %v1456_v30 = vpop.eup %1455 }
 0x3f5   : > { %v1288_v13 = vadd.f32 1.0, %v1456_v30 }
 0x3f7   : > { %1457 = vrcp.f32 %v1288_v13  ;;  %v1300_v14 = vand.u32 2147483648, %v1288_v13  ;;  %v1298_v48 = vand.u32 2147483647, %v1288_v13  ;;  %vm1294_vm10 = vweird.f32 %v1288_v13 }
 0x3f9   : > { %v1301_v17 = vor.u32 1.1754944e-38, %v1300_v14  ;;  %vm1299_vm13 = vcmp.eq.f32.partialorder %v1298_v48, 8.507059e+37 }
 0x3fd   : > { %v1458_v2 = vpop.eup %1457 }
 0x3fe   : > { %v1290_v51 = vmul.f32 %v1458_v2, %v1288_v13  ;;  %vm1295_vm9 = vweird.f32 %v1458_v2 }
 0x3ff   : > { %vm1296_vm11 = vmor %vm1294_vm10, %vm1295_vm9 }
 0x400   : > { %v1291_v39 = vsub.f32 1.0, %v1290_v51 }
 0x402   : > { %v1292_v15 = vmul.f32 %v1458_v2, %v1291_v39 }
 0x404   : > { %v1293_v16 = vadd.f32 %v1458_v2, %v1292_v15 }
 0x406   : > { %v1297_v18 = vsel %vm1296_vm11, %v1458_v2, %v1293_v16 }
 0x407   : > { %v1302_v62 = vsel %vm1299_vm13, %v1301_v17, %v1297_v18 }
 0x408   : > { %1305 = vst.msk [vmem:[%s513_s18] sm:$0xff] %vm1304_vm12, %v1302_v62 }
 0x409 PF: > { %s24_s29 = sadd.s32 1, %s1465_s29  }
 0x40a   : > { %p21_p4 = scmp.ge.s32.totalorder %s24_s29, 9  }
 0x40c   :  { %23 = sbr.rel (!%p21_p4) target bundleno = 1 (0x1), region = 115 }

</bundles_post_ra>
